<compile_context>
chip_gen: v7x
topology: tpu7x:2x2x1
jax: 0.10.0
libtpu: 0.0.40
codegen_flags: <defaults>
</compile_context>

<pallas_src>
import numpy as np
import jax
import jax.numpy as jnp
from jax.experimental import pallas as pl
from jax.experimental.pallas import tpu as pltpu

_LANE = 128
_SUBLANE = 8
# Per-buffer block cap on chips with 128 MiB VMEM (v5e/v6e); automatically
# reduced to vmem_capacity/16 (= 4 MiB) on v7x's 64 MiB VMEM.
_MAX_BLOCK_BYTES = 8 * 1024 * 1024


def _copy_kernel(x_ref, o_ref):
    # Elementwise identity copy of the current (block_rows, width) tile.
    o_ref[...] = x_ref[...]


def _infer_shape(total, shape):
    """Support torch.view-style -1 inference."""
    shape = list(shape)
    if -1 in shape:
        idx = shape.index(-1)
        known = 1
        for s in shape:
            if s != -1:
                known *= int(s)
        assert known > 0 and total % known == 0, "cannot infer -1 dimension"
        shape[idx] = total // known
    prod = 1
    for s in shape:
        prod *= int(s)
    assert prod == total, "reshape size mismatch"
    return tuple(int(s) for s in shape)


def _vmem_capacity_bytes():
    """Physical VMEM of the current TPU generation (conservative fallback)."""
    try:
        info = pltpu.get_tpu_info()
        cap = getattr(info, "vmem_capacity_bytes", None)
        if cap:
            return int(cap)
    except Exception:
        pass
    return 64 * 1024 * 1024  # v7x per-TC value: the most restrictive case


def _choose_width(total):
    """Widest lane-dense slab width (multiple of 128) that divides total."""
    for w in (2048, 1024, 512, 256, 128):
        if total % w == 0:
            return w
    return None


def _block_rows(rows, width, itemsize, vmem_cap):
    """Dtype- and generation-aware sublane block size."""
    # bf16 packs 2 rows per sublane, int8/fp8 pack 4 -> keep vregs fully packed.
    pack = max(1, 4 // max(1, itemsize))
    quantum = _SUBLANE * pack
    if rows <= quantum:
        # Tiny slab: single full-extent block (always a legal block shape).
        return rows

    row_bytes = width * itemsize
    total_bytes = rows * row_bytes

    # Largest block that fits the per-buffer budget for this generation.
    max_block_bytes = min(_MAX_BLOCK_BYTES, vmem_cap // 16)
    max_rows = max(quantum, (max_block_bytes // row_bytes) // quantum * quantum)

    # Keep >=2 (>=4 for larger tensors) grid steps so input/output DMAs
    # overlap via double buffering and the parallel axis can shard across
    # v7x's two TensorCores.
    if total_bytes > (4 << 20):
        min_blocks = 4
    elif total_bytes > (1 << 20):
        min_blocks = 2
    else:
        min_blocks = 1
    if min_blocks > 1:
        target = -(-rows // min_blocks)                     # ceil(rows / min_blocks)
        target = max(quantum, -(-target // quantum) * quantum)
        max_rows = min(max_rows, target)

    return min(max_rows, -(-rows // quantum) * quantum)


def pallas_reshape(x, shape, donate_input=False):
    """Equivalent of PytorchReshape(shape)(x): x.contiguous().view(*shape)."""
    total = 1
    for s in x.shape:
        total *= int(s)
    target_shape = _infer_shape(total, shape)

    # A contiguous row-major reshape is a pure metadata operation.  When the
    # caller donates the buffer, or the flat size is not a multiple of one
    # 128-lane row (ragged tail), or the tensor is empty, streaming through a
    # copy kernel only burns 2x total bytes of HBM bandwidth -> return the
    # zero-cost XLA reshape instead.
    # TODO(synk): a tiny tail-copy kernel could keep the ragged case fully in
    # Pallas, but it is strictly slower than the metadata-only reshape.
    if donate_input or total == 0 or total % _LANE != 0:
        return jnp.reshape(x, target_shape)

    itemsize = int(jnp.dtype(x.dtype).itemsize)
    width = _choose_width(total)
    rows = total // width
    # Free: row-major metadata reinterpretation (== torch .contiguous().view).
    x2d = x.reshape(rows, width)

    vmem_cap = _vmem_capacity_bytes()
    br = _block_rows(rows, width, itemsize, vmem_cap)
    grid = (pl.cdiv(rows, br),)

    block_bytes = br * width * itemsize
    # in + out, double-buffered, plus headroom for pipeline bookkeeping;
    # never exceed 3/4 of physical VMEM on this generation.
    vmem_limit = 4 * block_bytes + (16 << 20)
    vmem_limit = int(max(32 << 20, min(vmem_limit, vmem_cap * 3 // 4)))

    out2d = pl.pallas_call(
        _copy_kernel,
        out_shape=jax.ShapeDtypeStruct((rows, width), x.dtype),
        grid=grid,
        in_specs=[pl.BlockSpec((br, width), lambda i: (i, 0))],
        out_specs=pl.BlockSpec((br, width), lambda i: (i, 0)),
        compiler_params=pltpu.CompilerParams(
            dimension_semantics=("parallel",),
            vmem_limit_bytes=vmem_limit,
        ),
        cost_estimate=pl.CostEstimate(
            flops=0,
            transcendentals=0,
            bytes_accessed=2 * total * itemsize,
        ),
    )(x2d)

    return out2d.reshape(target_shape)


if __name__ == "__main__":
    key = jax.random.PRNGKey(0)

    # 1) Small NCHW-like input, PytorchReshape((2, -1)).
    x = jax.random.normal(key, (2, 4, 16, 16), dtype=jnp.float32)
    out = jax.block_until_ready(pallas_reshape(x, (2, -1)))
    ref = jnp.reshape(x, (2, 4 * 16 * 16))
    assert out.shape == ref.shape and out.dtype == ref.dtype
    np.testing.assert_array_equal(np.asarray(out), np.asarray(ref))

    # 2) Fully-specified target shape.
    out2 = jax.block_until_ready(pallas_reshape(x, (8, 16, 16)))
    np.testing.assert_array_equal(
        np.asarray(out2), np.asarray(jnp.reshape(x, (8, 16, 16)))
    )

    # 3) bf16 input (dtype-aware packing path).
    xb = x.astype(jnp.bfloat16)
    out3 = jax.block_until_ready(pallas_reshape(xb, (-1,)))
    np.testing.assert_array_equal(
        np.asarray(out3), np.asarray(jnp.reshape(xb, (-1,)))
    )

    # 4) Multi-block grid (>1 MiB tensor -> >=2 blocks) with a ragged last
    #    block -- exercises double-buffer overlap and Pallas edge masking.
    k2 = jax.random.PRNGKey(0)
    x4 = jax.random.normal(k2, (3, 50, 64, 64), dtype=jnp.float32)
    out4 = jax.block_until_ready(pallas_reshape(x4, (3, -1)))
    np.testing.assert_array_equal(
        np.asarray(out4), np.asarray(jnp.reshape(x4, (3, 50 * 64 * 64)))
    )

    # 5) Ragged total (not a multiple of 128) -- metadata-only fallback.
    x5 = jax.random.normal(k2, (2, 3, 5, 7), dtype=jnp.float32)
    out5 = jax.block_until_ready(pallas_reshape(x5, (6, 35)))
    np.testing.assert_array_equal(
        np.asarray(out5), np.asarray(jnp.reshape(x5, (6, 35)))
    )

    # 6) Donated-input path: skips the copy kernel entirely.
    out6 = jax.block_until_ready(pallas_reshape(x, (2, -1), donate_input=True))
    np.testing.assert_array_equal(np.asarray(out6), np.asarray(ref))

    print("KERNEL_OK")
</pallas_src>

<mosaic_0001>
module attributes {stable_mosaic.version = 11 : i64} {
  func.func @_copy_kernel(%arg0: i32, %arg1: memref<1x2048xf32, #tpu.memory_space<vmem>>, %arg2: memref<1x2048xf32, #tpu.memory_space<vmem>>) attributes {dimension_semantics = [#tpu.dimension_semantics<parallel>], iteration_bounds = array<i64: 1>, scalar_prefetch = 0 : i64, scratch_operands = 0 : i64, tpu.core_type = #tpu.core_type<tc>, window_params = [{transform_indices = @transform_0, window_bounds = array<i64: 1, 2048>}, {transform_indices = @transform_1, window_bounds = array<i64: 1, 2048>}]} {
    %c0 = arith.constant 0 : index
    %c0_0 = arith.constant 0 : index
    %0 = vector.load %arg1[%c0, %c0_0] : memref<1x2048xf32, #tpu.memory_space<vmem>>, vector<1x2048xf32>
    %c0_1 = arith.constant 0 : index
    %c0_2 = arith.constant 0 : index
    %1 = vector.load %arg2[%c0_1, %c0_2] : memref<1x2048xf32, #tpu.memory_space<vmem>>, vector<1x2048xf32>
    tpu.vector_store %arg2[%c0_1, %c0_2], %0 {strides = array<i32>} : memref<1x2048xf32, #tpu.memory_space<vmem>>, vector<1x2048xf32>,
    return
  }
  func.func @transform_0(%arg0: i32) -> (i32, i32) {
    %c0_i32 = arith.constant 0 : i32
    %c0_i32_0 = arith.constant 0 : i32
    return %arg0, %c0_i32 : i32, i32
  }
  func.func @transform_1(%arg0: i32) -> (i32, i32) {
    %c0_i32 = arith.constant 0 : i32
    %c0_i32_0 = arith.constant 0 : i32
    return %arg0, %c0_i32 : i32, i32
  }
}

</mosaic_0001>

<bundles_post_ra>
// kernel: tpu_custom_call.1
= control target key start
LH: loop header
LB: loop body
LE: loop exit
PB: predicated region body
PF: predicated region fallthrough
CT: control target
= control target key end

     0   :  { %6 = vsyncpa [#allocation3], 0  ;;  %s126_s0 = inlined_call_operand.hbm [shape: f32[1,2048], index: 0, kind: input, shape index: {}]   ;;  %s127_s1 = inlined_call_operand.hbm [shape: f32[1,2048], index: 1, kind: output, shape index: {}]  }
   0x1   :  { %7 = vsyncpa [#allocation4], 0  ;;  %s90_s6 = smov [#allocation2]   ;;  %s42_s10 = scalar_lea.hbm %s126_s0, 256 }
   0x2   :  { %s14_s7 = sshll.u32 %s90_s6, 4  ;;  %p43_p0 = scmp.ne.s32.totalorder %s126_s0, %s42_s10  ;;  %s15_s7 = int_to_ptr.vmem [resolvable:$true] %s14_s7 }
   0x3   :  { %p46_p1 = scmp.lt.u32.totalorder %s42_s10, %s126_s0 }
   0x5   :  { %p48_p2 = pnand %p46_p1, %p43_p0 }
   0x7   :  { %51 = shalt.err (!%p48_p2)
}
   0x8   :  { %s52_s15 = scalar_lea.vmem %s15_s7, 256  ;;  %p57_p4 = scmp.lt.s32.totalorder %s15_s7, %s15_s7 }
   0x9   :  { %p53_p3 = scmp.ne.s32.totalorder %s15_s7, %s52_s15  ;;  %p58_p5 = scmp.lt.s32.totalorder %s52_s15, %s52_s15 }
   0xb   :  { %p59_p6 = por %p58_p5, %p57_p4 }
   0xd   :  { %p60_p7 = pnand %p59_p6, %p53_p3 }
   0xf   :  { %63 = shalt.err (!%p60_p7)
}
  0x10   :  { %17 = dma.hbm_to_vmem [thread:$0]  %s126_s0, 256, %s15_s7, [#allocation3]  }
  0x11   :  { %86 = dma.done.wait [#allocation3], 256  }
  0x12   :  { %87 = vsyncadd [#allocation3], 4294967040  ;;  %s91_s18 = smov [#allocation5]   ;;  %v21_v0 = vld [vmem:[#allocation2] sm:$0xff]  ;;  %v22_v1 = vld [vmem:[#allocation2 + $0x8] sm:$0xff] }
  0x13   :  { %s31_s19 = sshll.u32 %s91_s18, 4  ;;  %23 = vst [vmem:[#allocation5] sm:$0xff] %v21_v0  ;;  %24 = vst [vmem:[#allocation5 + $0x8] sm:$0xff] %v22_v1  ;;  %s32_s19 = int_to_ptr.vmem [resolvable:$true] %s31_s19 }
  0x14   :  { %s64_s20 = scalar_lea.vmem %s32_s19, 256  ;;  %p69_p9 = scmp.lt.s32.totalorder %s32_s19, %s32_s19 }
  0x15   :  { %p65_p8 = scmp.ne.s32.totalorder %s32_s19, %s64_s20  ;;  %p70_p10 = scmp.lt.s32.totalorder %s64_s20, %s64_s20 }
  0x17   :  { %p71_p11 = por %p70_p10, %p69_p9 }
  0x19   :  { %p72_p12 = pnand %p71_p11, %p65_p8 }
  0x1b   :  { %75 = shalt.err (!%p72_p12)
}
  0x1c   :  { %s76_s0 = scalar_lea.hbm %s127_s1, 256 }
  0x1d   :  { %p77_p13 = scmp.ne.s32.totalorder %s127_s1, %s76_s0  ;;  %p80_p0 = scmp.lt.u32.totalorder %s76_s0, %s127_s1 }
  0x1f   :  { %p82_p1 = pnand %p80_p0, %p77_p13 }
  0x21   :  { %85 = shalt.err (!%p82_p1)
}
  0x22   :  { %34 = dma.vmem_to_hbm [thread:$0]  %s32_s19, 256, %s127_s1, [#allocation4]  }
  0x23   :  { %88 = dma.done.wait [#allocation4], 256  }
  0x24   :  { %89 = vsyncadd [#allocation4], 4294967040 }
  0x25   :  { %38 = vsyncpa [#allocation3], 1 }
  0x26   :  { %39 = vsyncpa [#allocation4], 1 }

</bundles_post_ra>
